<compile_context>
chip_gen: v7x
topology: tpu7x:2x2x1
jax: 0.10.0
libtpu: 0.0.40
codegen_flags: <defaults>
</compile_context>

<pallas_src>
import functools

import jax
import jax.numpy as jnp
from jax import lax
from jax.experimental import pallas as pl
from jax.experimental.pallas import tpu as pltpu


# ---------------------------------------------------------------------------
# helpers
# ---------------------------------------------------------------------------

def _pow_int(base, g):
    """base ** g for a small non-negative integer g via VPU multiplies."""
    acc = None
    while g:
        if g & 1:
            acc = base if acc is None else acc * base
        g >>= 1
        if g:
            base = base * base
    return jnp.ones_like(base) if acc is None else acc


def _focal_term(logpt, gamma):
    """(1 - exp(logpt)) ** gamma, gamma static and != 0."""
    pt = jnp.exp(logpt)
    one_m_pt = jnp.maximum(1.0 - pt, 0.0)       # exp rounding can give pt > 1
    if float(gamma) == int(gamma) and int(gamma) >= 0:
        return _pow_int(one_m_pt, int(gamma))
    return one_m_pt ** jnp.float32(gamma)


def _target_dtype(c):
    if c <= 127:
        return jnp.int8
    if c <= 32767:
        return jnp.int16
    return jnp.int32


def _alpha_vec(alpha, c):
    """Per-class alpha as a pre-negated f32 vector (or None)."""
    if alpha is None:
        return None
    if isinstance(alpha, (float, int)) and not isinstance(alpha, bool):
        assert c == 2, "scalar alpha implies binary classification"
        a = jnp.array([float(alpha), 1.0 - float(alpha)], jnp.float32)
    else:
        a = jnp.asarray(alpha, jnp.float32).reshape(-1)
        assert a.shape[0] == c
    return -a                                   # loss = focal * (logpt * (-alpha_t))


def _device_budgets():
    """(max working-tile bytes (f32), vmem_limit_bytes) per TPU generation."""
    try:
        kind = jax.devices()[0].device_kind.lower()
    except Exception:
        kind = ""
    if any(tag in kind for tag in ("v4", "v5", "v6", "trillium")):
        return 8 << 20, 64 << 20                # 128 MiB VMEM chips
    return 4 << 20, 48 << 20                    # v7x (64 MiB / TC) or unknown


# ---------------------------------------------------------------------------
# kernels
# ---------------------------------------------------------------------------

def _focal_kernel_nchw(x_ref, t_ref, *rest, gamma, has_alpha, n_total,
                       hw_total, block_n, block_hw):
    """Blocks: x (BN, C, T) with classes on sublanes, spatial on lanes."""
    if has_alpha:
        a_ref, o_ref = rest
    else:
        (o_ref,) = rest

    x = x_ref[...].astype(jnp.float32)                     # (BN, C, T)
    t = t_ref[...].astype(jnp.int32)                       # (BN, 1, T)

    # log-softmax pieces over the class (sublane) axis; the full (BN,C,T)
    # log-prob tensor is never materialized.
    m = jnp.max(x, axis=1, keepdims=True)
    z = x - m
    lse = jnp.log(jnp.sum(jnp.exp(z), axis=1, keepdims=True))      # (BN,1,T)

    cls = lax.broadcasted_iota(jnp.int32, x.shape, 1)
    onehot = cls == t                                              # (BN,C,T)
    z_t = jnp.sum(jnp.where(onehot, z, 0.0), axis=1, keepdims=True)
    logpt = z_t - lse                                              # (BN,1,T)

    if has_alpha:
        a_neg = a_ref[...].astype(jnp.float32)                     # (1,C,1) pre-negated
        at_neg = jnp.sum(jnp.where(onehot, a_neg, 0.0), axis=1, keepdims=True)
        weighted = logpt * at_neg                                  # = -alpha_t * logpt
    else:
        weighted = -logpt

    if float(gamma) == 0.0:
        loss = weighted
    else:
        loss = _focal_term(logpt, gamma) * weighted                # (BN,1,T)

    # Mask ragged edge blocks (no HBM pad copy).  Select-based -> NaN safe.
    if n_total % block_n != 0:
        i = pl.program_id(0)
        b = lax.broadcasted_iota(jnp.int32, loss.shape, 0) + i * block_n
        loss = jnp.where(b < n_total, loss, 0.0)
    if hw_total % block_hw != 0:
        s = pl.program_id(1)
        col = lax.broadcasted_iota(jnp.int32, loss.shape, 2) + s * block_hw
        loss = jnp.where(col < hw_total, loss, 0.0)

    # One partial sum per grid step -> fully parallel grid, no shared acc.
    o_ref[...] = jnp.sum(loss).reshape(1, 1)


def _focal_kernel_2d(x_ref, t_ref, *rest, gamma, has_alpha, b_total, block_b):
    """Blocks: x (BB, C) with batch on sublanes, classes on lanes (no transpose)."""
    if has_alpha:
        a_ref, o_ref = rest
    else:
        (o_ref,) = rest

    x = x_ref[...].astype(jnp.float32)                     # (BB, C)
    t = t_ref[...].astype(jnp.int32)                       # (BB, 1)

    m = jnp.max(x, axis=1, keepdims=True)
    z = x - m
    lse = jnp.log(jnp.sum(jnp.exp(z), axis=1, keepdims=True))      # (BB,1)

    cls = lax.broadcasted_iota(jnp.int32, x.shape, 1)
    onehot = cls == t                                              # (BB,C)
    z_t = jnp.sum(jnp.where(onehot, z, 0.0), axis=1, keepdims=True)
    logpt = z_t - lse                                              # (BB,1)

    if has_alpha:
        a_neg = a_ref[...].astype(jnp.float32)                     # (1,C) pre-negated
        at_neg = jnp.sum(jnp.where(onehot, a_neg, 0.0), axis=1, keepdims=True)
        weighted = logpt * at_neg
    else:
        weighted = -logpt

    if float(gamma) == 0.0:
        loss = weighted
    else:
        loss = _focal_term(logpt, gamma) * weighted

    if b_total % block_b != 0:
        i = pl.program_id(0)
        r = lax.broadcasted_iota(jnp.int32, loss.shape, 0) + i * block_b
        loss = jnp.where(r < b_total, loss, 0.0)

    o_ref[...] = jnp.sum(loss).reshape(1, 1)


# ---------------------------------------------------------------------------
# wrappers
# ---------------------------------------------------------------------------

def _focal_loss_nchw(x, target, gamma, alpha, size_average,
                     max_tile_bytes, vmem_limit_bytes):
    n, c = x.shape[0], x.shape[1]
    hw = 1
    for d in x.shape[2:]:
        hw *= d
    x3 = x.reshape(n, c, hw)                                # free reshape, no transpose
    t3 = target.reshape(n, 1, hw).astype(_target_dtype(c))  # narrow, lane-dense

    a_neg = _alpha_vec(alpha, c)
    has_alpha = a_neg is not None

    # Tile sizing in f32 working bytes; lane dim multiple of 128 or full extent.
    work = 4
    if hw <= 128:
        block_hw = hw
    else:
        lanes_budget = max(128, (max_tile_bytes // (c * work)) // 128 * 128)
        block_hw = max(128, min((hw // 128) * 128, lanes_budget))
    block_n = max(1, min(n, max_tile_bytes // (c * block_hw * work)))

    # Ensure the "parallel" grid has >=2 steps so both v7x TensorCores get work.
    if pl.cdiv(n, block_n) * pl.cdiv(hw, block_hw) < 2:
        if block_hw > 128:
            block_hw = max(128, (block_hw // 2) // 128 * 128)
        elif block_n > 1:
            block_n = (block_n + 1) // 2

    gn = pl.cdiv(n, block_n)
    gs = pl.cdiv(hw, block_hw)

    kernel = functools.partial(
        _focal_kernel_nchw, gamma=float(gamma), has_alpha=has_alpha,
        n_total=n, hw_total=hw, block_n=block_n, block_hw=block_hw)

    in_specs = [
        pl.BlockSpec((block_n, c, block_hw), lambda i, s: (i, 0, s)),
        pl.BlockSpec((block_n, 1, block_hw), lambda i, s: (i, 0, s)),
    ]
    args = [x3, t3]
    if has_alpha:
        in_specs.append(pl.BlockSpec((1, c, 1), lambda i, s: (0, 0, 0)))
        args.append(a_neg.reshape(1, c, 1))

    partials = pl.pallas_call(
        kernel,
        out_shape=jax.ShapeDtypeStruct((gn, gs, 1, 1), jnp.float32),
        grid_spec=pltpu.PrefetchScalarGridSpec(
            num_scalar_prefetch=0,
            grid=(gn, gs),
            in_specs=in_specs,
            out_specs=pl.BlockSpec((None, None, 1, 1),
                                   lambda i, s: (i, s, 0, 0)),
        ),
        compiler_params=pltpu.CompilerParams(
            dimension_semantics=("parallel", "parallel"),
            vmem_limit_bytes=vmem_limit_bytes,
        ),
    )(*args)

    total = jnp.sum(partials)
    if size_average:
        total = total / jnp.float32(n * hw)
    return total


def _focal_loss_2d(x, target, gamma, alpha, size_average,
                   max_tile_bytes, vmem_limit_bytes):
    b, c = x.shape                          # classes stay on lanes: no HBM transpose
    t2 = target.reshape(b, 1).astype(jnp.int32)

    a_neg = _alpha_vec(alpha, c)
    has_alpha = a_neg is not None

    work = 4
    rows_budget = max(8, (max_tile_bytes // (c * work)) // 8 * 8)
    block_b = b if rows_budget >= b else rows_budget
    if pl.cdiv(b, block_b) < 2 and block_b > 8:     # give v7x's two TCs work
        block_b = max(8, -(-((block_b + 1) // 2) // 8) * 8)
    gb = pl.cdiv(b, block_b)

    kernel = functools.partial(
        _focal_kernel_2d, gamma=float(gamma), has_alpha=has_alpha,
        b_total=b, block_b=block_b)

    in_specs = [
        pl.BlockSpec((block_b, c), lambda i: (i, 0)),
        pl.BlockSpec((block_b, 1), lambda i: (i, 0)),
    ]
    args = [x, t2]
    if has_alpha:
        in_specs.append(pl.BlockSpec((1, c), lambda i: (0, 0)))
        args.append(a_neg.reshape(1, c))

    partials = pl.pallas_call(
        kernel,
        out_shape=jax.ShapeDtypeStruct((gb, 1, 1), jnp.float32),
        grid_spec=pltpu.PrefetchScalarGridSpec(
            num_scalar_prefetch=0,
            grid=(gb,),
            in_specs=in_specs,
            out_specs=pl.BlockSpec((None, 1, 1), lambda i: (i, 0, 0)),
        ),
        compiler_params=pltpu.CompilerParams(
            dimension_semantics=("parallel",),
            vmem_limit_bytes=vmem_limit_bytes,
        ),
    )(*args)

    total = jnp.sum(partials)
    if size_average:
        total = total / jnp.float32(b)
    return total


def focal_loss(x, target, *, gamma=0.0, alpha=None, size_average=True,
               max_tile_bytes=None, vmem_limit_bytes=None):
    """Focal loss matching the PyTorch FocalLoss forward.

    x: logits (N, C, *spatial) or (N, C); target: int class ids with matching
    leading/spatial dims.
    """
    auto_tile, auto_vmem = _device_budgets()
    if max_tile_bytes is None:
        max_tile_bytes = auto_tile
    if vmem_limit_bytes is None:
        vmem_limit_bytes = auto_vmem

    if x.ndim > 2:
        return _focal_loss_nchw(x, target, gamma, alpha, size_average,
                                max_tile_bytes, vmem_limit_bytes)
    return _focal_loss_2d(x, target, gamma, alpha, size_average,
                          max_tile_bytes, vmem_limit_bytes)


# ---------------------------------------------------------------------------
# pure-JAX reference (mirrors the PyTorch module)
# ---------------------------------------------------------------------------

def _focal_loss_ref(x, target, *, gamma=0.0, alpha=None, size_average=True):
    if x.ndim > 2:
        c = x.shape[1]
        x = jnp.moveaxis(x, 1, -1).reshape(-1, c)
    t = target.reshape(-1)
    logp = jax.nn.log_softmax(x.astype(jnp.float32), axis=1)
    logpt = jnp.take_along_axis(logp, t[:, None], axis=1)[:, 0]
    pt = jnp.exp(logpt)
    if alpha is not None:
        if isinstance(alpha, (float, int)):
            a = jnp.array([alpha, 1.0 - alpha], jnp.float32)
        else:
            a = jnp.asarray(alpha, jnp.float32)
        logpt = logpt * a[t]
    loss = -1.0 * (1.0 - pt) ** gamma * logpt
    return loss.mean() if size_average else loss.sum()


if __name__ == "__main__":
    key = jax.random.PRNGKey(0)
    kx, kt, kx2, kt2 = jax.random.split(key, 4)

    # --- NCHW segmentation-style input ---
    N, C, H, W = 2, 4, 16, 16
    x = jax.random.normal(kx, (N, C, H, W), jnp.float32)
    target = jax.random.randint(kt, (N, H, W), 0, C, jnp.int32)

    # check 1: gamma=2 (integer fast path), per-class alpha, mean reduction
    gamma = 2.0
    alpha = [0.1, 0.2, 0.3, 0.4]
    loss = focal_loss(x, target, gamma=gamma, alpha=alpha, size_average=True)
    jax.block_until_ready(loss)
    ref = _focal_loss_ref(x, target, gamma=gamma, alpha=alpha, size_average=True)
    assert jnp.allclose(loss, ref, rtol=2e-5, atol=1e-6), (loss, ref)

    # check 2: default module config (gamma=0, no alpha), sum reduction
    loss2 = focal_loss(x, target, gamma=0.0, alpha=None, size_average=False)
    jax.block_until_ready(loss2)
    ref2 = _focal_loss_ref(x, target, gamma=0.0, alpha=None, size_average=False)
    assert jnp.allclose(loss2, ref2, rtol=2e-5, atol=1e-5), (loss2, ref2)

    # check 3: 2-D classification path (no transpose), non-integer gamma, alpha
    B2, C2 = 37, 10
    x2 = jax.random.normal(kx2, (B2, C2), jnp.float32)
    t2 = jax.random.randint(kt2, (B2,), 0, C2, jnp.int32)
    alpha2 = [0.05 * (i + 1) for i in range(C2)]
    loss3 = focal_loss(x2, t2, gamma=1.5, alpha=alpha2, size_average=True)
    jax.block_until_ready(loss3)
    ref3 = _focal_loss_ref(x2, t2, gamma=1.5, alpha=alpha2, size_average=True)
    assert jnp.allclose(loss3, ref3, rtol=2e-5, atol=1e-6), (loss3, ref3)

    print("KERNEL_OK")
</pallas_src>

<mosaic_0001>
module attributes {stable_mosaic.version = 11 : i64} {
  func.func @_focal_kernel_nchw(%arg0: i32, %arg1: i32, %arg2: memref<2x4x128xf32, #tpu.memory_space<vmem>>, %arg3: memref<2x1x128xi8, #tpu.memory_space<vmem>>, %arg4: memref<1x4x1xf32, #tpu.memory_space<vmem>>, %arg5: memref<1x1x1x1xf32, #tpu.memory_space<vmem>>) attributes {dimension_semantics = [#tpu.dimension_semantics<parallel>, #tpu.dimension_semantics<parallel>], iteration_bounds = array<i64: 1, 2>, scalar_prefetch = 0 : i64, scratch_operands = 0 : i64, tpu.core_type = #tpu.core_type<tc>, window_params = [{transform_indices = @transform_0, window_bounds = array<i64: 2, 4, 128>}, {transform_indices = @transform_1, window_bounds = array<i64: 2, 1, 128>}, {pipeline_mode = #tpu.pipeline_mode<synchronous>, transform_indices = @transform_2, window_bounds = array<i64: 1, 4, 1>}, {transform_indices = @transform_3, window_bounds = array<i64: 1, 1, 1, 1>}]} {
    %c0 = arith.constant 0 : index
    %c0_0 = arith.constant 0 : index
    %c0_1 = arith.constant 0 : index
    %0 = vector.load %arg2[%c0, %c0_0, %c0_1] : memref<2x4x128xf32, #tpu.memory_space<vmem>>, vector<2x4x128xf32>
    %c0_2 = arith.constant 0 : index
    %c0_3 = arith.constant 0 : index
    %c0_4 = arith.constant 0 : index
    %1 = vector.load %arg3[%c0_2, %c0_3, %c0_4] : memref<2x1x128xi8, #tpu.memory_space<vmem>>, vector<2x1x128xi8>
    %2 = arith.extsi %1 : vector<2x1x128xi8> to vector<2x1x128xi32>
    %cst = arith.constant dense<0xFF800000> : vector<2x128xf32>
    %3 = vector.multi_reduction <maximumf>, %0, %cst [1] : vector<2x4x128xf32> to vector<2x128xf32>
    %4 = vector.shape_cast %3 : vector<2x128xf32> to vector<2x1x128xf32>
    %5 = vector.broadcast %4 : vector<2x1x128xf32> to vector<2x4x128xf32>
    %6 = arith.subf %0, %5 : vector<2x4x128xf32>
    %7 = math.exp %6 : vector<2x4x128xf32>
    %cst_5 = arith.constant dense<0.000000e+00> : vector<2x128xf32>
    %8 = vector.multi_reduction <add>, %7, %cst_5 [1] : vector<2x4x128xf32> to vector<2x128xf32>
    %9 = vector.shape_cast %8 : vector<2x128xf32> to vector<2x1x128xf32>
    %10 = math.log %9 : vector<2x1x128xf32>
    %11 = tpu.iota {dimensions = array<i32: 1>} : vector<2x4x128xi32>
    %12 = vector.broadcast %2 : vector<2x1x128xi32> to vector<2x4x128xi32>
    %13 = arith.cmpi eq, %11, %12 : vector<2x4x128xi32>
    %cst_6 = arith.constant 0.000000e+00 : f32
    %14 = vector.broadcast %cst_6 : f32 to vector<2x4x128xf32>
    %15 = arith.select %13, %6, %14 : vector<2x4x128xi1>, vector<2x4x128xf32>
    %cst_7 = arith.constant dense<0.000000e+00> : vector<2x128xf32>
    %16 = vector.multi_reduction <add>, %15, %cst_7 [1] : vector<2x4x128xf32> to vector<2x128xf32>
    %17 = vector.shape_cast %16 : vector<2x128xf32> to vector<2x1x128xf32>
    %18 = arith.subf %17, %10 : vector<2x1x128xf32>
    %c0_8 = arith.constant 0 : index
    %c0_9 = arith.constant 0 : index
    %c0_10 = arith.constant 0 : index
    %19 = vector.load %arg4[%c0_8, %c0_9, %c0_10] : memref<1x4x1xf32, #tpu.memory_space<vmem>>, vector<1x4x1xf32>
    %cst_11 = arith.constant 0.000000e+00 : f32
    %20 = vector.shape_cast %19 : vector<1x4x1xf32> to vector<1x4x1xf32>
    %21 = vector.broadcast %20 : vector<1x4x1xf32> to vector<2x4x128xf32>
    %22 = vector.broadcast %cst_11 : f32 to vector<2x4x128xf32>
    %23 = arith.select %13, %21, %22 : vector<2x4x128xi1>, vector<2x4x128xf32>
    %cst_12 = arith.constant dense<0.000000e+00> : vector<2x128xf32>
    %24 = vector.multi_reduction <add>, %23, %cst_12 [1] : vector<2x4x128xf32> to vector<2x128xf32>
    %25 = vector.shape_cast %24 : vector<2x128xf32> to vector<2x1x128xf32>
    %26 = arith.mulf %18, %25 : vector<2x1x128xf32>
    %27 = math.exp %18 : vector<2x1x128xf32>
    %cst_13 = arith.constant 1.000000e+00 : f32
    %28 = vector.broadcast %cst_13 : f32 to vector<2x1x128xf32>
    %29 = arith.subf %28, %27 : vector<2x1x128xf32>
    %cst_14 = arith.constant 0.000000e+00 : f32
    %30 = vector.broadcast %cst_14 : f32 to vector<2x1x128xf32>
    %31 = arith.maximumf %29, %30 : vector<2x1x128xf32>
    %32 = arith.mulf %31, %31 : vector<2x1x128xf32>
    %33 = arith.mulf %32, %26 : vector<2x1x128xf32>
    %34 = vector.shape_cast %33 : vector<2x1x128xf32> to vector<1x2x1x128xf32>
    %cst_15 = arith.constant dense<0.000000e+00> : vector<1xf32>
    %35 = vector.multi_reduction <add>, %34, %cst_15 [1, 2, 3] : vector<1x2x1x128xf32> to vector<1xf32>
    %36 = vector.shape_cast %35 : vector<1xf32> to vector<1x1x1x1xf32>
    %37 = vector.extract %36[0, 0, 0, 0] : f32 from vector<1x1x1x1xf32>
    %38 = vector.broadcast %37 : f32 to vector<1x1xf32>
    %c0_16 = arith.constant 0 : index
    %c0_17 = arith.constant 0 : index
    %c0_18 = arith.constant 0 : index
    %c0_19 = arith.constant 0 : index
    %39 = vector.load %arg5[%c0_16, %c0_17, %c0_18, %c0_19] : memref<1x1x1x1xf32, #tpu.memory_space<vmem>>, vector<1x1x1x1xf32>
    %40 = vector.shape_cast %39 : vector<1x1x1x1xf32> to vector<1x1xf32>
    %41 = vector.shape_cast %38 : vector<1x1xf32> to vector<1x1x1x1xf32>
    tpu.vector_store %arg5[%c0_16, %c0_17, %c0_18, %c0_19], %41 {strides = array<i32>} : memref<1x1x1x1xf32, #tpu.memory_space<vmem>>, vector<1x1x1x1xf32>,
    return
  }
  func.func @transform_0(%arg0: i32, %arg1: i32) -> (i32, i32, i32) {
    %c0_i32 = arith.constant 0 : i32
    %c0_i32_0 = arith.constant 0 : i32
    return %arg0, %c0_i32, %arg1 : i32, i32, i32
  }
  func.func @transform_1(%arg0: i32, %arg1: i32) -> (i32, i32, i32) {
    %c0_i32 = arith.constant 0 : i32
    %c0_i32_0 = arith.constant 0 : i32
    return %arg0, %c0_i32, %arg1 : i32, i32, i32
  }
  func.func @transform_2(%arg0: i32, %arg1: i32) -> (i32, i32, i32) {
    %c0_i32 = arith.constant 0 : i32
    %c0_i32_0 = arith.constant 0 : i32
    %c0_i32_1 = arith.constant 0 : i32
    %c0_i32_2 = arith.constant 0 : i32
    return %c0_i32, %c0_i32_0, %c0_i32_1 : i32, i32, i32
  }
  func.func @transform_3(%arg0: i32, %arg1: i32) -> (i32, i32, i32, i32) {
    %c0_i32 = arith.constant 0 : i32
    %c0_i32_0 = arith.constant 0 : i32
    %c0_i32_1 = arith.constant 0 : i32
    return %arg0, %arg1, %c0_i32, %c0_i32_0 : i32, i32, i32, i32
  }
}

</mosaic_0001>

<bundles_post_ra>
// kernel: tpu_custom_call.1
= control target key start
LH: loop header
LB: loop body
LE: loop exit
PB: predicated region body
PF: predicated region fallthrough
CT: control target
= control target key end

     0   :  { %8 = vsyncpa [#allocation3], 0  ;;  %s837_s0 = inlined_call_operand.hbm [shape: f32[2,4,256], index: 0, kind: input, shape index: {}]   ;;  %s838_s1 = inlined_call_operand.vmem [shape: s8[2,1,256], index: 1, kind: input, shape index: {}]   ;;  %s839_s2 = inlined_call_operand.vmem [shape: f32[1,4,1], index: 2, kind: input, shape index: {}]   ;;  %s840_s3 = inlined_call_operand.vmem [shape: f32[1,2,1,1], index: 3, kind: output, shape index: {}]  }
   0x1   :  { %10 = vsyncpa [#allocation3 + $0x1], 0  ;;  %s693_s12 = smov 0   ;;  %s695_s13 = smov 0  }
   0x2   :  { %s697_s14 = smov 0   ;;  %s699_s15 = smov 0  }
   0x3   :  { %s701_s16 = smov 0   ;;  %s703_s17 = smov 0  }
   0x4 LB: > { %s507_s18 = sadd.s32 4294967295, %s666_s17   ;;  %s25_s19 = sadd.s32 1, %s662_s16  ;;  %s666_s17 = sphi %s703_s17, %s16_s17   ;;  %s662_s16 = sphi %s701_s16, %s847_s16   ;;  %s658_s15 = sphi %s699_s15, %s846_s15   ;;  %s654_s14 = sphi %s697_s14, %s845_s14   ;;  %s650_s13 = sphi %s695_s13, %s844_s13   ;;  %s646_s12 = sphi %s693_s12, %s843_s12  }
   0x5   : > { %p26_p0 = scmp.ge.s32.totalorder %s25_s19, 2  ;;  %s37_s20 = sadd.s32 1, %s654_s14 }
   0x6   : > { %p44_p1 = scmp.ne.s32.totalorder %s654_s14, %s650_s13  ;;  %p45_p2 = scmp.eq.s32.totalorder %s666_s17, 0 }
   0x7   : > { %s849_s19 = smov (%p26_p0, %s25_s19), 0  ;;  %p50_p4 = scmp.ne.s32.totalorder %s650_s13, %s646_s12 }
   0x8   : > { %p729_p3 = por %p45_p2, %p44_p1  ;;  %s33_s22 = ssub.s32 %s662_s16, %s849_s19 }
   0x9   : > { %p51_p5 = scmp.eq.s32.totalorder %s507_s18, 0  ;;  %p35_p6 = scmp.eq.s32.totalorder %s33_s22, 0 }
   0xa   : > { %p510_p8 = scmp.ge.s32.totalorder %s666_s17, 2 }
   0xb   : > { %p736_p7 = por %p51_p5, %p50_p4  ;;  %s745_s25 = sand.u32 (!%p510_p8), 1, %s654_s14  }
   0xc   : > { %s741_s24 = scalar_select %p35_p6, %s654_s14, %s37_s20  }
   0xd   : > { %150 = sbr.rel (%p510_p8) target bundleno = 45 (0x2d), region = 20  ;;  %s512_s26 = sshll.u32 (!%p510_p8), %s662_s16, 6 }
   0xe   : > { %s511_s27 = sshll.u32 (!%p510_p8), %s745_s25, 3  ;;  %s752_s30 = scalar_lea.hbm (!%p510_p8), %s837_s0, %s512_s26 }
   0xf   : > { %s158_s4 = scalar_lea.vmem (!%p510_p8), [#allocation2], %s511_s27  ;;  %s155_s6 = scalar_lea.sflag (!%p510_p8), [#allocation3], %s745_s25 }
  0x10   : > { %s167_s5 = sshll.u32 (!%p510_p8), %s158_s4, 4  ;;  %s588_s7 = scalar_lea.hbm (!%p510_p8), %s752_s30, 128  ;;  %s754_s5 = int_to_ptr.vmem [resolvable:$true] %s167_s5 }
  0x11   : > { %p589_p9 = scmp.ne.s32.totalorder (!%p510_p8), %s752_s30, %s588_s7  ;;  %s592_s10 = scalar_lea.hbm (!%p510_p8), %s837_s0, 256 }
  0x12   : > { %p593_p12 = scmp.lt.u32.totalorder (!%p510_p8), %s752_s30, %s837_s0  ;;  %p594_p13 = scmp.lt.u32.totalorder (!%p510_p8), %s592_s10, %s588_s7 }
  0x13   : > { %p590_p10 = pnand (!%p510_p8), %p589_p9, %p729_p3  ;;  %p596_p1 = scmp.lt.u32.totalorder (!%p510_p8), %s588_s7, %s752_s30 }
  0x14   : > { %p595_p0 = por %p594_p13, %p593_p12 }
  0x15   : > { %p591_p11 = pneg %p590_p10 }
  0x16   : > { %p597_p2 = por %p596_p1, %p595_p0 }
  0x18   : > { %p598_p4 = pnand %p597_p2, %p591_p11 }
  0x1a   : > { %601 = shalt.err (!%p598_p4)
}
  0x1b   : > { %s602_s18 = scalar_lea.vmem %s754_s5, 128  ;;  %s668_s20 = smov [#allocation2]  }
  0x1c   : > { %p603_p5 = scmp.ne.s32.totalorder %s754_s5, %s602_s18  ;;  %s606_s22 = sshll.u32 %s668_s20, 4  ;;  %s607_s22 = int_to_ptr.vmem [resolvable:$false] %s606_s22 }
  0x1d   : > { %s608_s26 = scalar_lea.vmem %s607_s22, 256  ;;  %p609_p9 = scmp.lt.s32.totalorder %s754_s5, %s607_s22 }
  0x1e   : > { %p604_p6 = pnand %p603_p5, %p729_p3  ;;  %p610_p10 = scmp.lt.s32.totalorder %s608_s26, %s602_s18 }
  0x20   : > { %p605_p8 = pneg %p604_p6  ;;  %p611_p12 = por %p610_p10, %p609_p9 }
  0x22   : > { %p612_p13 = pnand %p611_p12, %p605_p8 }
  0x24   : > { %615 = shalt.err (!%p612_p13)
}
  0x25   : > { %s669_s27 = smov 128   ;;  %s670_s28 = smov 64  }
  0x26   : > { %s671_s29 = smov 4   ;;  %176 = sbr.rel (!%p729_p3) target bundleno = 45 (0x2d), region = 28 }
  0x27   : > { %521 = dma.hbm_to_vmem [thread:$0]  (%p729_p3), %s752_s30, 128, %s754_s5, %s155_s6, %s669_s27, %s670_s28, %s671_s29  }
  0x28   : > { %s513_s4 = sshll.u32 (%p729_p3), %s745_s25, 1  ;;  %s184_s9 = scalar_lea.vmem (%p729_p3), %s838_s1, %s662_s16 }
  0x29   : > { %v200_v0 = vld [vmem:[%s184_s9] sm:$0x1] (%p729_p3)  ;;  %v202_v1 = vld [vmem:[%s184_s9 + $0x2] sm:$0x1] (%p729_p3)  ;;  %s180_s10 = scalar_lea.vmem (%p729_p3), [#allocation4], %s513_s4 }
  0x2a   : > { %201 = vst [vmem:[%s180_s10] sm:$0x1] (%p729_p3), %v200_v0  ;;  %203 = vst [vmem:[%s180_s10 + $0x1] sm:$0x1] (%p729_p3), %v202_v1 }
  0x2d PF: > { %p514_p11 = scmp.ge.s32.totalorder %s666_s17, 1  ;;  %p221_p0 = scmp.lt.s32.totalorder %s666_s17, 3 }
  0x2f   : > { %p222_p1 = pnand %p514_p11, %p221_p0 }
  0x30   : > { %s790_s21 = sand.u32 (!%p222_p1), 1, %s650_s13  }
  0x31   : > { %225 = sbr.rel (%p222_p1) target bundleno = 414 (0x19e), region = 62  ;;  %s515_s25 = sshll.u32 (!%p222_p1), %s790_s21, 3 }
  0x32   : > { %s228_s30 = scalar_lea.sflag (!%p222_p1), [#allocation3], %s790_s21  ;;  %s231_s5 = scalar_lea.vmem (!%p222_p1), [#allocation2], %s515_s25 }
  0x38   : > { %641 = dma.done.wait (%p736_p7), %s228_s30, 128  }
  0x39   : > { %643 = vsyncadd (%p736_p7), %s228_s30, 4294967168  ;;  %v672_v2 = vmov 0   ;;  %v351_v3 = vld [vmem:[%s839_s2] sm:$0xf]  ;;  %vm282_vm0 = vcmask 1043456   ;;  %s516_s23 = sshll.u32 %s790_s21, 1  ;;  %v321_v24 = vlaneseq }
  0x3a   : > { %575 = vset.pattern.permute.xlu0 %v672_v2  ;;  %v276_v4 = vld [vmem:[%s231_s5] sm:$0xf]  ;;  %v277_v5 = vld [vmem:[%s231_s5 + $0x4] sm:$0xf]  ;;  %s239_s12 = scalar_lea.vmem [#allocation4], %s516_s23  ;;  %vm387_vm3 = vcmask 1040384  }
  0x3b   : > { %354 = vperm.xlu0 %575, %v351_v3   ;;  %v283_v6 = vsel %vm282_vm0, %v276_v4, -inf  ;;  %v290_v7 = vsel %vm282_vm0, %v277_v5, -inf  ;;  %v322_v27 = vshrl.u32 %v321_v24, 7  ;;  %v278_v28 = vld [vmem:[%s239_s12] sm:$0x1]  ;;  %p271_p3 = scmp.lt.s32.totalorder %s658_s15, 1 }
  0x3c   : > { %v284_v8 = vrot.slane %v283_v6, 4  ;;  %v291_v9 = vrot.slane %v290_v7, 4  ;;  %v279_v30 = vld [vmem:[%s239_s12 + $0x1] sm:$0x1]  ;;  %v280_v33 = vunpack.c.0.s8 %v278_v28  ;;  %vm401_vm4 = vcmask 0  }
  0x3d   : > { %v325_v32 = vsub.s32 0, %v322_v27  ;;  %v281_v35 = vunpack.c.0.s8 %v279_v30  ;;  %s851_s15 = smov (!%p271_p3, %s658_s15), 1 }
  0x3e   : > { %v285_v10 = vmax.f32 %v283_v6, %v284_v8  ;;  %v292_v11 = vmax.f32 %v290_v7, %v291_v9  ;;  %s275_s22 = scalar_lea.vmem %s840_s3, %s851_s15 }
  0x3f   : > { %v326_v37 = vrot.slane %v280_v33, %v325_v32  ;;  %v330_v39 = vrot.slane %v281_v35, %v325_v32 }
  0x40   : > { %v286_v12 = vrot.slane %v285_v10, 2  ;;  %v293_v13 = vrot.slane %v292_v11, 2 }
  0x41   : > { %vm331_vm1 = vcmp.eq.s32.totalorder %v322_v27, %v326_v37  ;;  %vm332_vm2 = vcmp.eq.s32.totalorder %v322_v27, %v330_v39 }
  0x42   : > { %v287_v14 = vmax.f32 %v285_v10, %v286_v12  ;;  %v294_v15 = vmax.f32 %v292_v11, %v293_v13 }
  0x44   : > { %v288_v16 = vrot.slane %v287_v14, 1  ;;  %v295_v17 = vrot.slane %v294_v15, 1 }
  0x46   : > { %v289_v18 = vmax.f32 %v287_v14, %v288_v16  ;;  %v296_v19 = vmax.f32 %v294_v15, %v295_v17 }
  0x48   : > { %v297_v20 = vsub.f32 %v276_v4, %v289_v18  ;;  %v298_v21 = vsub.f32 %v277_v5, %v296_v19 }
  0x4a   : > { %v299_v22 = vmul.f32 1.442695, %v297_v20  ;;  %v301_v23 = vmul.f32 1.442695, %v298_v21  ;;  %v333_v43 = vsel %vm331_vm1, %v297_v20, 0.0  ;;  %v334_v44 = vsel %vm332_vm2, %v298_v21, 0.0 }
  0x4b   : > { %v335_v47 = vsel %vm282_vm0, %v333_v43, 0.0  ;;  %v342_v48 = vsel %vm282_vm0, %v334_v44, 0.0 }
  0x4c   : > { %576 = vpow2.f32 %v299_v22  ;;  %v336_v50 = vrot.slane %v335_v47, 4  ;;  %v343_v52 = vrot.slane %v342_v48, 4 }
  0x4d   : > { %578 = vpow2.f32 %v301_v23 }
  0x4e   : > { %v337_v54 = vadd.f32 %v336_v50, %v335_v47  ;;  %v344_v56 = vadd.f32 %v343_v52, %v342_v48 }
  0x50   : > { %v338_v57 = vrot.slane %v337_v54, 2  ;;  %v345_v58 = vrot.slane %v344_v56, 2 }
  0x52   : > { %v339_v59 = vadd.f32 %v338_v57, %v337_v54  ;;  %v346_v60 = vadd.f32 %v345_v58, %v344_v56 }
  0x54   : > { %v340_v61 = vrot.slane %v339_v59, 1  ;;  %v347_v63 = vrot.slane %v346_v60, 1 }
  0x56   : > { %v577_v25 = vpop.eup %576  ;;  %v341_v1 = vadd.f32 %v340_v61, %v339_v59  ;;  %v348_v3 = vadd.f32 %v347_v63, %v346_v60 }
  0x57   : > { %v579_v26 = vpop.eup %578  ;;  %v303_v29 = vsel %vm282_vm0, %v577_v25, 0.0 }
  0x58   : > { %v310_v31 = vsel %vm282_vm0, %v579_v26, 0.0  ;;  %v304_v34 = vrot.slane %v303_v29, 4 }
  0x59   : > { %v311_v36 = vrot.slane %v310_v31, 4 }
  0x5a   : > { %v305_v38 = vadd.f32 %v304_v34, %v303_v29 }
  0x5b   : > { %v312_v40 = vadd.f32 %v311_v36, %v310_v31 }
  0x5c   : > { %v306_v41 = vrot.slane %v305_v38, 2 }
  0x5d   : > { %v313_v42 = vrot.slane %v312_v40, 2 }
  0x5e   : > { %v307_v45 = vadd.f32 %v306_v41, %v305_v38 }
  0x5f   : > { %v314_v46 = vadd.f32 %v313_v42, %v312_v40 }
  0x60   : > { %v308_v49 = vrot.slane %v307_v45, 1 }
  0x61   : > { %v315_v51 = vrot.slane %v314_v46, 1 }
  0x62   : > { %v309_v53 = vadd.f32 %v308_v49, %v307_v45 }
  0x63   : > { %v316_v55 = vadd.f32 %v315_v51, %v314_v46 }
  0x64   : > { %580 = vlog2.f32 %v309_v53 }
  0x65   : > { %582 = vlog2.f32 %v316_v55 }
  0x6e   : > { %v581_v62 = vpop.eup %580 }
  0x6f   : > { %v583_v0 = vpop.eup %582  ;;  %v318_v2 = vmul.f32 0.6931472, %v581_v62 }
  0x70   : > { %v320_v4 = vmul.f32 0.6931472, %v583_v0 }
  0x71   : > { %v349_v5 = vsub.f32 %v341_v1, %v318_v2 }
  0x72   : > { %v350_v6 = vsub.f32 %v348_v3, %v320_v4 }
  0x73   : > { %v375_v7 = vmul.f32 1.442695, %v349_v5 }
  0x74   : > { %v377_v8 = vmul.f32 1.442695, %v350_v6 }
  0x75   : > { %584 = vpow2.f32 %v375_v7 }
  0x76   : > { %586 = vpow2.f32 %v377_v8 }
  0x7f   : > { %v585_v10 = vpop.eup %584 }
  0x80   : > { %v587_v13 = vpop.eup %586  ;;  %v379_v20 = vsub.f32 1.0, %v585_v10 }
  0x81   : > { %v380_v21 = vsub.f32 1.0, %v587_v13 }
  0x82   : > { %v381_v26 = vmax.f32 %v379_v20, 0.0 }
  0x83   : > { %v382_v28 = vmax.f32 %v380_v21, 0.0 }
  0x84   : > { %v383_v32 = vmul.f32 %v381_v26, %v381_v26 }
  0x85   : > { %v384_v33 = vmul.f32 %v382_v28, %v382_v28 }
  0xba   : > { %v355_v9 = vpop.permute.xlu0 %354 }
  0xbb   : > { %v357_v11 = vsel %vm331_vm1, %v355_v9, 0.0  ;;  %v358_v12 = vsel %vm332_vm2, %v355_v9, 0.0 }
  0xbc   : > { %v359_v14 = vsel %vm282_vm0, %v357_v11, 0.0  ;;  %v366_v15 = vsel %vm282_vm0, %v358_v12, 0.0 }
  0xbd   : > { %v360_v16 = vrot.slane %v359_v14, 4  ;;  %v367_v17 = vrot.slane %v366_v15, 4 }
  0xbf   : > { %v361_v18 = vadd.f32 %v360_v16, %v359_v14  ;;  %v368_v19 = vadd.f32 %v367_v17, %v366_v15 }
  0xc1   : > { %v362_v22 = vrot.slane %v361_v18, 2  ;;  %v369_v23 = vrot.slane %v368_v19, 2 }
  0xc3   : > { %v363_v24 = vadd.f32 %v362_v22, %v361_v18  ;;  %v370_v25 = vadd.f32 %v369_v23, %v368_v19 }
  0xc5   : > { %v364_v29 = vrot.slane %v363_v24, 1  ;;  %v371_v27 = vrot.slane %v370_v25, 1 }
  0xc7   : > { %v365_v30 = vadd.f32 %v364_v29, %v363_v24  ;;  %v372_v31 = vadd.f32 %v371_v27, %v370_v25 }
  0xc9   : > { %v373_v34 = vmul.f32 %v365_v30, %v349_v5  ;;  %v374_v35 = vmul.f32 %v372_v31, %v350_v6 }
  0xcb   : > { %v385_v36 = vmul.f32 %v383_v32, %v373_v34  ;;  %v386_v37 = vmul.f32 %v384_v33, %v374_v35 }
  0xcd   : > { %v388_v38 = vsel %vm387_vm3, %v385_v36, 0.0  ;;  %v389_v39 = vsel %vm387_vm3, %v386_v37, 0.0 }
  0xce   : > { %v390_v40 = vadd.f32 %v389_v39, %v388_v38 }
  0xd0   : > { %391 = vadd.xlane.f32.xlu0 %v390_v40 }
 0x15d   : > { %v392_v41 = vpop.xlane.xlu0 %391 }
 0x15e   : > { %v393_v42 = vrot.slane %v392_v41, 4 }
 0x160   : > { %v394_v43 = vadd.f32 %v393_v42, %v392_v41 }
 0x162   : > { %v395_v44 = vrot.slane %v394_v43, 2 }
 0x164   : > { %v396_v45 = vadd.f32 %v395_v44, %v394_v43 }
 0x166   : > { %v397_v46 = vrot.slane %v396_v45, 1 }
 0x168   : > { %v398_v47 = vadd.f32 %v397_v46, %v396_v45 }
 0x16a   : > { %519 = vpush %v398_v47 }
 0x19b   : > { %s520_s26 = spop %519 }
 0x19c   : > { %v400_v48 = vstv %s520_s26 }
 0x19d   : > { %402 = vst.msk [vmem:[%s275_s22] sm:$0x1] %vm401_vm4, %v400_v48 }
 0x19e PF: > { %s16_s17 = sadd.s32 1, %s666_s17   ;;  %s843_s12 = smov %s650_s13 }
 0x19f   : > { %p13_p7 = scmp.ge.s32.totalorder %s16_s17, 4   ;;  %s844_s13 = smov %s654_s14 }
 0x1a0   : > { %s845_s14 = smov %s741_s24  ;;  %s846_s15 = smov %s662_s16 }
 0x1a1   : > { %s847_s16 = smov %s849_s19  ;;  %15 = sbr.rel (!%p13_p7) target bundleno = 4 (0x4), region = 114 }
 0x1a8   :  { %428 = vsyncpa [#allocation3], 1 }
 0x1a9   :  { %430 = vsyncpa [#allocation3 + $0x1], 1 }

</bundles_post_ra>
